<compile_context>
chip_gen: v7x
topology: tpu7x:2x2x1
jax: 0.10.0
libtpu: 0.0.40
codegen_flags: <defaults>
</compile_context>

<pallas_src>
import functools

import jax
import jax.numpy as jnp
from jax.experimental import pallas as pl
from jax.experimental.pallas import tpu as pltpu

_EPS = 1e-8          # torch F.cosine_similarity eps
_LANE = 128
_SUBLANE = 8


def _round_up(x, m):
    return ((x + m - 1) // m) * m


def _vmem_capacity_bytes():
    """Trace-time VMEM capacity; conservative (v7x per-TC) fallback."""
    try:
        cap = getattr(pltpu.get_tpu_info(), "vmem_capacity_bytes", None)
        if cap:
            return int(cap)
    except Exception:
        pass
    return 64 * 1024 * 1024


def _default_num_cores():
    """Best-effort TensorCore count (2 on v7x, 1 elsewhere); safe fallback 2."""
    try:
        info = pltpu.get_tpu_info()
        for name in ("num_cores", "tensorcore_count", "num_tensorcores",
                     "core_count"):
            v = getattr(info, name, None)
            if isinstance(v, int) and v >= 1:
                return min(int(v), 2)
    except Exception:
        pass
    return 2


def _loss_partials_kernel(p_ref, y_ref, sse_ref, closs_ref, *,
                          n_rows, row_tile, tiles_per_core, has_ragged):
    """Accumulates per-core scalar partials for one core's slice of rows.

    sse_ref, closs_ref are (1, 1) f32 output blocks that stay resident (same
    block index) across the inner 'arbitrary' grid axis — per-core scalar
    accumulators written back to HBM once per core.
    """
    c = pl.program_id(0)   # core / parallel axis
    i = pl.program_id(1)   # row-tile loop within this core (reduction axis)

    @pl.when(i == 0)
    def _():
        sse_ref[...] = jnp.zeros_like(sse_ref)
        closs_ref[...] = jnp.zeros_like(closs_ref)

    p = p_ref[...].astype(jnp.float32)          # (row_tile, d)
    y = y_ref[...].astype(jnp.float32)          # (row_tile, d)

    # Per-row reductions needed by the cosine term; the squared error reuses
    # them via ||p - y||^2 = ||p||^2 + ||y||^2 - 2<p, y>.
    dot = jnp.sum(p * y, axis=-1, keepdims=True)                   # (row_tile, 1)
    nx2 = jnp.sum(p * p, axis=-1, keepdims=True)
    ny2 = jnp.sum(y * y, axis=-1, keepdims=True)

    sse_rows = nx2 + ny2 - 2.0 * dot                               # (row_tile, 1)

    # 1 / max(||x||, eps) == rsqrt(max(||x||^2, eps^2))  -> EUP, no divide
    inv_nx = jax.lax.rsqrt(jnp.maximum(nx2, _EPS * _EPS))
    inv_ny = jax.lax.rsqrt(jnp.maximum(ny2, _EPS * _EPS))
    closs_rows = 1.0 - dot * inv_nx * inv_ny                       # (row_tile, 1)

    if not has_ragged:
        # N divides the tiling exactly: no mask anywhere (decided at trace time).
        sse_ref[...] += jnp.sum(sse_rows, axis=0, keepdims=True)
        closs_ref[...] += jnp.sum(closs_rows, axis=0, keepdims=True)
    else:
        row_start = (c * tiles_per_core + i) * row_tile

        @pl.when(row_start + row_tile <= n_rows)
        def _():
            # Fully in-bounds tile: plain accumulate, no iota/compare/where.
            sse_ref[...] += jnp.sum(sse_rows, axis=0, keepdims=True)
            closs_ref[...] += jnp.sum(closs_rows, axis=0, keepdims=True)

        @pl.when(row_start + row_tile > n_rows)
        def _():
            # Ragged tile: rows past n_rows hold undefined data (no HBM pad
            # copy any more) -> mask BOTH partials before reducing.
            row_ids = row_start + jax.lax.broadcasted_iota(
                jnp.int32, (row_tile, 1), 0)
            valid = row_ids < n_rows
            sse_ref[...] += jnp.sum(
                jnp.where(valid, sse_rows, 0.0), axis=0, keepdims=True)
            closs_ref[...] += jnp.sum(
                jnp.where(valid, closs_rows, 0.0), axis=0, keepdims=True)


def mse_cos_loss(y_pred, y, cos_weight=0.5, *, row_tile=None, num_cores=None):
    n, d = y_pred.shape
    assert y.shape == (n, d)

    itemsize = jnp.dtype(y_pred.dtype).itemsize
    # Native sublane multiple for the storage dtype: 8 f32 / 16 bf16 / 32 int8.
    sublane = max(_SUBLANE, 32 // max(itemsize, 1))
    # Lane-padded per-row footprint in VMEM (HBM traffic stays at d*itemsize).
    dp_vmem = _round_up(max(d, 1), _LANE)

    # VMEM budget gated on the chip: 128 MiB parts (v5e/v6e) can afford larger
    # double-buffered tiles; keep the v7x-safe 32/48 MiB sizing otherwise.
    vmem_cap = _vmem_capacity_bytes()
    if vmem_cap >= 96 * 1024 * 1024:
        per_tile_budget = 12 * 1024 * 1024      # per input, per buffer
        vmem_limit_cap = 80 * 1024 * 1024
    else:
        per_tile_budget = 8 * 1024 * 1024
        vmem_limit_cap = 48 * 1024 * 1024

    if num_cores is None:
        num_cores = _default_num_cores()
    # Don't create a core whose rows would be entirely padding.
    num_cores = max(1, min(num_cores, pl.cdiv(n, sublane)))

    # Byte-based row-tile sizing (no hard row cap): biggest tile that keeps
    # 2 inputs x 2 buffers within the budget, bounded by the per-core rows.
    if row_tile is None:
        rows_per_core = _round_up(max(pl.cdiv(n, num_cores), 1), sublane)
        max_rows_budget = max(sublane,
                              per_tile_budget // (dp_vmem * itemsize))
        row_tile = min(max_rows_budget, rows_per_core)
        row_tile = max(sublane, (row_tile // sublane) * sublane)

    tiles_per_core = pl.cdiv(n, num_cores * row_tile)
    n_pad = num_cores * tiles_per_core * row_tile
    has_ragged = n_pad != n

    kernel = functools.partial(
        _loss_partials_kernel,
        n_rows=n, row_tile=row_tile, tiles_per_core=tiles_per_core,
        has_ragged=has_ragged)

    # Feature dim = full array extent (no 128 padding, no HBM pad copies).
    in_spec = pl.BlockSpec((row_tile, d),
                           lambda c, i: (c * tiles_per_core + i, 0))
    # Tiny per-core scalar accumulators (resident across the 'arbitrary' axis).
    out_spec = pl.BlockSpec((None, 1, 1), lambda c, i: (c, 0, 0))
    out_shape = jax.ShapeDtypeStruct((num_cores, 1, 1), jnp.float32)

    # 2 inputs x 2 buffers of the lane-padded tile + tiny outputs + headroom.
    vmem_needed = (4 * _round_up(row_tile, sublane) * dp_vmem * itemsize
                   + 64 * 1024)
    vmem_limit = int(min(vmem_limit_cap,
                         max(vmem_needed + (4 << 20), 16 << 20)))

    cost = pl.CostEstimate(
        flops=8 * n * d,
        transcendentals=2 * n,
        bytes_accessed=2 * n * d * itemsize + 2 * num_cores * 4)

    o_sse, o_closs = pl.pallas_call(
        kernel,
        out_shape=(out_shape, out_shape),
        grid_spec=pltpu.PrefetchScalarGridSpec(
            num_scalar_prefetch=0,
            grid=(num_cores, tiles_per_core),
            in_specs=[in_spec, in_spec],
            out_specs=[out_spec, out_spec]),
        compiler_params=pltpu.CompilerParams(
            dimension_semantics=("parallel", "arbitrary"),
            vmem_limit_bytes=vmem_limit),
        cost_estimate=cost,
    )(y_pred, y)

    # Final normalization + weighted combine (scalar glue) in JAX.
    mse = jnp.sum(o_sse) / (n * d)          # MSELoss (mean over all elements)
    cos_loss = jnp.sum(o_closs) / n         # CosineEmbeddingLoss (mean over rows)
    return (1.0 - cos_weight) * mse + cos_weight * cos_loss


if __name__ == "__main__":
    key = jax.random.PRNGKey(0)
    k1, k2 = jax.random.split(key)
    N, D = 16, 32
    y_pred = jax.random.normal(k1, (N, D), dtype=jnp.float32)
    y = jax.random.normal(k2, (N, D), dtype=jnp.float32)

    out = mse_cos_loss(y_pred, y, cos_weight=0.5)
    out = jax.block_until_ready(out)

    # pure-JAX reference (same semantics as the PyTorch module, incl. torch's
    # per-norm eps clamp in cosine_similarity)
    mse_ref = jnp.mean((y_pred - y) ** 2)
    nx = jnp.linalg.norm(y_pred, axis=-1)
    ny = jnp.linalg.norm(y, axis=-1)
    cos_ref = jnp.sum(y_pred * y, axis=-1) / (
        jnp.maximum(nx, _EPS) * jnp.maximum(ny, _EPS))
    ref = 0.5 * mse_ref + 0.5 * jnp.mean(1.0 - cos_ref)

    assert jnp.allclose(out, ref, atol=1e-5, rtol=1e-5), (out, ref)
    print("KERNEL_OK")
</pallas_src>

<mosaic_0001>
module attributes {stable_mosaic.version = 11 : i64} {
  func.func @_loss_partials_kernel(%arg0: i32, %arg1: i32, %arg2: memref<8x32xf32, #tpu.memory_space<vmem>>, %arg3: memref<8x32xf32, #tpu.memory_space<vmem>>, %arg4: memref<1x1x1xf32, #tpu.memory_space<vmem>>, %arg5: memref<1x1x1xf32, #tpu.memory_space<vmem>>) attributes {dimension_semantics = [#tpu.dimension_semantics<parallel>, #tpu.dimension_semantics<arbitrary>], iteration_bounds = array<i64: 2, 1>, scalar_prefetch = 0 : i64, scratch_operands = 0 : i64, tpu.core_type = #tpu.core_type<tc>, window_params = [{transform_indices = @transform_0, window_bounds = array<i64: 8, 32>}, {transform_indices = @transform_1, window_bounds = array<i64: 8, 32>}, {transform_indices = @transform_2, window_bounds = array<i64: 1, 1, 1>}, {transform_indices = @transform_3, window_bounds = array<i64: 1, 1, 1>}]} {
    %c0_i32 = arith.constant 0 : i32
    %0 = arith.cmpi eq, %arg1, %c0_i32 : i32
    %1 = arith.extui %0 : i1 to i32
    %c0_i32_0 = arith.constant 0 : i32
    %2 = arith.cmpi ne, %1, %c0_i32_0 : i32
    scf.if %2 {
      %cst_24 = arith.constant 0.000000e+00 : f32
      %44 = vector.broadcast %cst_24 : f32 to vector<1x1xf32>
      %c0_25 = arith.constant 0 : index
      %c0_26 = arith.constant 0 : index
      %c0_27 = arith.constant 0 : index
      %45 = vector.load %arg4[%c0_25, %c0_26, %c0_27] : memref<1x1x1xf32, #tpu.memory_space<vmem>>, vector<1x1x1xf32>
      %46 = vector.shape_cast %45 : vector<1x1x1xf32> to vector<1x1xf32>
      %47 = vector.shape_cast %44 : vector<1x1xf32> to vector<1x1x1xf32>
      tpu.vector_store %arg4[%c0_25, %c0_26, %c0_27], %47 {strides = array<i32>} : memref<1x1x1xf32, #tpu.memory_space<vmem>>, vector<1x1x1xf32>,
      %cst_28 = arith.constant 0.000000e+00 : f32
      %48 = vector.broadcast %cst_28 : f32 to vector<1x1xf32>
      %c0_29 = arith.constant 0 : index
      %c0_30 = arith.constant 0 : index
      %c0_31 = arith.constant 0 : index
      %49 = vector.load %arg5[%c0_29, %c0_30, %c0_31] : memref<1x1x1xf32, #tpu.memory_space<vmem>>, vector<1x1x1xf32>
      %50 = vector.shape_cast %49 : vector<1x1x1xf32> to vector<1x1xf32>
      %51 = vector.shape_cast %48 : vector<1x1xf32> to vector<1x1x1xf32>
      tpu.vector_store %arg5[%c0_29, %c0_30, %c0_31], %51 {strides = array<i32>} : memref<1x1x1xf32, #tpu.memory_space<vmem>>, vector<1x1x1xf32>,
    } else {
    }
    %c0 = arith.constant 0 : index
    %c0_1 = arith.constant 0 : index
    %3 = vector.load %arg2[%c0, %c0_1] : memref<8x32xf32, #tpu.memory_space<vmem>>, vector<8x32xf32>
    %c0_2 = arith.constant 0 : index
    %c0_3 = arith.constant 0 : index
    %4 = vector.load %arg3[%c0_2, %c0_3] : memref<8x32xf32, #tpu.memory_space<vmem>>, vector<8x32xf32>
    %5 = arith.mulf %3, %4 : vector<8x32xf32>
    %cst = arith.constant dense<0.000000e+00> : vector<8xf32>
    %6 = vector.multi_reduction <add>, %5, %cst [1] : vector<8x32xf32> to vector<8xf32>
    %7 = vector.shape_cast %6 : vector<8xf32> to vector<8x1xf32>
    %8 = arith.mulf %3, %3 : vector<8x32xf32>
    %cst_4 = arith.constant dense<0.000000e+00> : vector<8xf32>
    %9 = vector.multi_reduction <add>, %8, %cst_4 [1] : vector<8x32xf32> to vector<8xf32>
    %10 = vector.shape_cast %9 : vector<8xf32> to vector<8x1xf32>
    %11 = arith.mulf %4, %4 : vector<8x32xf32>
    %cst_5 = arith.constant dense<0.000000e+00> : vector<8xf32>
    %12 = vector.multi_reduction <add>, %11, %cst_5 [1] : vector<8x32xf32> to vector<8xf32>
    %13 = vector.shape_cast %12 : vector<8xf32> to vector<8x1xf32>
    %14 = arith.addf %10, %13 : vector<8x1xf32>
    %cst_6 = arith.constant 2.000000e+00 : f32
    %15 = vector.broadcast %cst_6 : f32 to vector<8x1xf32>
    %16 = arith.mulf %15, %7 : vector<8x1xf32>
    %17 = arith.subf %14, %16 : vector<8x1xf32>
    %cst_7 = arith.constant 1.000000e-16 : f32
    %18 = vector.broadcast %cst_7 : f32 to vector<8x1xf32>
    %19 = arith.maximumf %10, %18 : vector<8x1xf32>
    %20 = math.rsqrt %19 : vector<8x1xf32>
    %cst_8 = arith.constant 1.000000e-16 : f32
    %21 = vector.broadcast %cst_8 : f32 to vector<8x1xf32>
    %22 = arith.maximumf %13, %21 : vector<8x1xf32>
    %23 = math.rsqrt %22 : vector<8x1xf32>
    %24 = arith.mulf %7, %20 : vector<8x1xf32>
    %25 = arith.mulf %24, %23 : vector<8x1xf32>
    %cst_9 = arith.constant 1.000000e+00 : f32
    %26 = vector.broadcast %cst_9 : f32 to vector<8x1xf32>
    %27 = arith.subf %26, %25 : vector<8x1xf32>
    %c0_10 = arith.constant 0 : index
    %c0_11 = arith.constant 0 : index
    %c0_12 = arith.constant 0 : index
    %28 = vector.load %arg4[%c0_10, %c0_11, %c0_12] : memref<1x1x1xf32, #tpu.memory_space<vmem>>, vector<1x1x1xf32>
    %29 = vector.shape_cast %28 : vector<1x1x1xf32> to vector<1x1xf32>
    %cst_13 = arith.constant dense<0.000000e+00> : vector<1xf32>
    %30 = vector.multi_reduction <add>, %17, %cst_13 [0] : vector<8x1xf32> to vector<1xf32>
    %31 = vector.shape_cast %30 : vector<1xf32> to vector<1x1xf32>
    %32 = arith.addf %29, %31 : vector<1x1xf32>
    %c0_14 = arith.constant 0 : index
    %c0_15 = arith.constant 0 : index
    %c0_16 = arith.constant 0 : index
    %33 = vector.load %arg4[%c0_14, %c0_15, %c0_16] : memref<1x1x1xf32, #tpu.memory_space<vmem>>, vector<1x1x1xf32>
    %34 = vector.shape_cast %33 : vector<1x1x1xf32> to vector<1x1xf32>
    %35 = vector.shape_cast %32 : vector<1x1xf32> to vector<1x1x1xf32>
    tpu.vector_store %arg4[%c0_14, %c0_15, %c0_16], %35 {strides = array<i32>} : memref<1x1x1xf32, #tpu.memory_space<vmem>>, vector<1x1x1xf32>,
    %c0_17 = arith.constant 0 : index
    %c0_18 = arith.constant 0 : index
    %c0_19 = arith.constant 0 : index
    %36 = vector.load %arg5[%c0_17, %c0_18, %c0_19] : memref<1x1x1xf32, #tpu.memory_space<vmem>>, vector<1x1x1xf32>
    %37 = vector.shape_cast %36 : vector<1x1x1xf32> to vector<1x1xf32>
    %cst_20 = arith.constant dense<0.000000e+00> : vector<1xf32>
    %38 = vector.multi_reduction <add>, %27, %cst_20 [0] : vector<8x1xf32> to vector<1xf32>
    %39 = vector.shape_cast %38 : vector<1xf32> to vector<1x1xf32>
    %40 = arith.addf %37, %39 : vector<1x1xf32>
    %c0_21 = arith.constant 0 : index
    %c0_22 = arith.constant 0 : index
    %c0_23 = arith.constant 0 : index
    %41 = vector.load %arg5[%c0_21, %c0_22, %c0_23] : memref<1x1x1xf32, #tpu.memory_space<vmem>>, vector<1x1x1xf32>
    %42 = vector.shape_cast %41 : vector<1x1x1xf32> to vector<1x1xf32>
    %43 = vector.shape_cast %40 : vector<1x1xf32> to vector<1x1x1xf32>
    tpu.vector_store %arg5[%c0_21, %c0_22, %c0_23], %43 {strides = array<i32>} : memref<1x1x1xf32, #tpu.memory_space<vmem>>, vector<1x1x1xf32>,
    return
  }
  func.func @transform_0(%arg0: i32, %arg1: i32) -> (i32, i32) {
    %c1_i32 = arith.constant 1 : i32
    %0 = arith.muli %arg0, %c1_i32 : i32
    %1 = arith.addi %0, %arg1 : i32
    %c0_i32 = arith.constant 0 : i32
    %c0_i32_0 = arith.constant 0 : i32
    return %1, %c0_i32 : i32, i32
  }
  func.func @transform_1(%arg0: i32, %arg1: i32) -> (i32, i32) {
    %c1_i32 = arith.constant 1 : i32
    %0 = arith.muli %arg0, %c1_i32 : i32
    %1 = arith.addi %0, %arg1 : i32
    %c0_i32 = arith.constant 0 : i32
    %c0_i32_0 = arith.constant 0 : i32
    return %1, %c0_i32 : i32, i32
  }
  func.func @transform_2(%arg0: i32, %arg1: i32) -> (i32, i32, i32) {
    %c0_i32 = arith.constant 0 : i32
    %c0_i32_0 = arith.constant 0 : i32
    %c0_i32_1 = arith.constant 0 : i32
    return %arg0, %c0_i32, %c0_i32_0 : i32, i32, i32
  }
  func.func @transform_3(%arg0: i32, %arg1: i32) -> (i32, i32, i32) {
    %c0_i32 = arith.constant 0 : i32
    %c0_i32_0 = arith.constant 0 : i32
    %c0_i32_1 = arith.constant 0 : i32
    return %arg0, %c0_i32, %c0_i32_0 : i32, i32, i32
  }
}

</mosaic_0001>

<bundles_post_ra>
// kernel: tpu_custom_call.1
= control target key start
LH: loop header
LB: loop body
LE: loop exit
PB: predicated region body
PF: predicated region fallthrough
CT: control target
= control target key end

     0   :  { %9 = vsyncpa [#allocation3], 0  ;;  %s819_s0 = inlined_call_operand.hbm [shape: f32[16,32], index: 0, kind: input, shape index: {}]   ;;  %s820_s1 = inlined_call_operand.hbm [shape: f32[16,32], index: 1, kind: input, shape index: {}]   ;;  %s821_s2 = inlined_call_operand.vmem [shape: f32[2,1,1], index: 2, kind: output, shape index: {0}]   ;;  %s822_s3 = inlined_call_operand.vmem [shape: f32[2,1,1], index: 3, kind: output, shape index: {1}]  }
   0x1   :  { %11 = vsyncpa [#allocation3 + $0x1], 0 }
   0x2   :  { %12 = vsyncpa [#allocation5], 0 }
   0x3   :  { %14 = vsyncpa [#allocation5 + $0x1], 0  ;;  %s635_s12 = smov 0   ;;  %s637_s13 = smov 0  }
   0x4   :  { %s639_s14 = smov 0   ;;  %s641_s15 = smov 0  }
   0x5   :  { %s643_s16 = smov 0   ;;  %s645_s17 = smov 0  }
   0x6 LB: > { %s418_s18 = sadd.s32 4294967295, %s610_s17   ;;  %s32_s19 = sadd.s32 1, %s606_s16  ;;  %s610_s17 = sphi %s645_s17, %s20_s17   ;;  %s606_s16 = sphi %s643_s16, %s836_s16   ;;  %s602_s15 = sphi %s641_s15, %s835_s15   ;;  %s598_s14 = sphi %s639_s14, %s834_s14   ;;  %s594_s13 = sphi %s637_s13, %s833_s13   ;;  %s590_s12 = sphi %s635_s12, %s832_s12  }
   0x7   : > { %p34_p0 = scmp.ge.s32.totalorder %s32_s19, 2  ;;  %s41_s20 = sadd.s32 1, %s598_s14 }
   0x8   : > { %p48_p1 = scmp.ne.s32.totalorder %s598_s14, %s594_s13  ;;  %p49_p2 = scmp.eq.s32.totalorder %s610_s17, 0 }
   0x9   : > { %s838_s19 = smov (%p34_p0, %s32_s19), 0  ;;  %p54_p4 = scmp.ne.s32.totalorder %s594_s13, %s590_s12 }
   0xa   : > { %p671_p3 = por %p49_p2, %p48_p1  ;;  %s38_s22 = ssub.s32 %s606_s16, %s838_s19 }
   0xb   : > { %p55_p5 = scmp.eq.s32.totalorder %s418_s18, 0  ;;  %p39_p6 = scmp.eq.s32.totalorder %s38_s22, 0 }
   0xc   : > { %p442_p8 = scmp.lt.s32.totalorder %s610_s17, 2  ;;  %s687_s25 = sand.u32 1, %s598_s14  }
   0xd   : > { %p678_p7 = por %p55_p5, %p54_p4  ;;  %s423_s26 = sshll.u32 %s606_s16, 7 }
   0xe   : > { %s684_s24 = scalar_select %p39_p6, %s598_s14, %s41_s20  }
   0xf   : > { %s825_s23 = scalar_select %p678_p7, 1, 0 }
  0x10   : > { %s422_s27 = sshll.u32 %s687_s25, 3  ;;  %s696_s30 = scalar_lea.hbm %s819_s0, %s423_s26 }
  0x11   : > { %s162_s4 = scalar_lea.vmem [#allocation2], %s422_s27  ;;  %p702_p9 = pnand %p442_p8, %p671_p3 }
  0x12   : > { %s170_s5 = sshll.u32 %s162_s4, 4  ;;  %s159_s7 = scalar_lea.sflag [#allocation3], %s687_s25  ;;  %s706_s5 = int_to_ptr.vmem [resolvable:$true] %s170_s5 }
  0x13   : > { %s496_s8 = scalar_lea.hbm %s696_s30, 128  ;;  %p498_p13 = pneg %p702_p9 }
  0x14   : > { %p497_p12 = scmp.ne.s32.totalorder %s696_s30, %s496_s8  ;;  %s501_s11 = scalar_lea.hbm %s819_s0, 256 }
  0x15   : > { %p502_p2 = scmp.lt.u32.totalorder %s696_s30, %s819_s0  ;;  %p503_p3 = scmp.lt.u32.totalorder %s501_s11, %s496_s8 }
  0x16   : > { %p499_p0 = pnand %p498_p13, %p497_p12  ;;  %p505_p5 = scmp.lt.u32.totalorder %s496_s8, %s696_s30 }
  0x17   : > { %p504_p4 = por %p503_p3, %p502_p2 }
  0x18   : > { %p500_p1 = pneg %p499_p0 }
  0x19   : > { %p506_p6 = por %p505_p5, %p504_p4 }
  0x1b   : > { %p507_p8 = pnand %p506_p6, %p500_p1 }
  0x1d   : > { %510 = shalt.err (!%p507_p8)
}
  0x1e   : > { %s511_s20 = scalar_lea.vmem %s706_s5, 128  ;;  %s612_s21 = smov [#allocation2]  }
  0x1f   : > { %p512_p12 = scmp.ne.s32.totalorder %s706_s5, %s511_s20  ;;  %s516_s22 = sshll.u32 %s612_s21, 4  ;;  %s517_s22 = int_to_ptr.vmem [resolvable:$false] %s516_s22 }
  0x20   : > { %s518_s28 = scalar_lea.vmem %s517_s22, 256  ;;  %p519_p11 = scmp.lt.s32.totalorder %s706_s5, %s517_s22 }
  0x21   : > { %p514_p0 = pnand %p512_p12, %p498_p13  ;;  %p520_p2 = scmp.lt.s32.totalorder %s518_s28, %s511_s20 }
  0x23   : > { %p515_p10 = pneg %p514_p0  ;;  %p521_p3 = por %p520_p2, %p519_p11 }
  0x25   : > { %p522_p4 = pnand %p521_p3, %p515_p10 }
  0x27   : > { %525 = shalt.err (!%p522_p4)
}
  0x28   : > { %438 = dma.hbm_to_vmem [thread:$0]  (!%p702_p9), %s696_s30, 128, %s706_s5, %s159_s7  }
  0x29   : > { %p827_p1 = scmp.lt.s32.totalorder %s610_s17, 3  ;;  %p828_p5 = scmp.ge.s32.totalorder %s610_s17, 1 }
  0x2a   : > { %s749_s9 = scalar_lea.hbm %s820_s1, %s423_s26  ;;  %s181_s10 = scalar_lea.vmem [#allocation4], %s422_s27 }
  0x2b   : > { %p740_p6 = pnand %p828_p5, %p827_p1  ;;  %s189_s11 = sshll.u32 %s181_s10, 4  ;;  %s190_s11 = int_to_ptr.vmem [resolvable:$true] %s189_s11 }
  0x2c   : > { %s178_s30 = scalar_lea.sflag [#allocation5], %s687_s25  ;;  %s526_s5 = scalar_lea.hbm %s749_s9, 128 }
  0x2d   : > { %s829_s29 = scalar_select %p740_p6, 1, 0 }
  0x2e   : > { %p527_p10 = scmp.ne.s32.totalorder %s749_s9, %s526_s5  ;;  %s531_s26 = scalar_lea.hbm %s820_s1, 256 }
  0x2f   : > { %p532_p12 = scmp.lt.u32.totalorder %s749_s9, %s820_s1  ;;  %p533_p0 = scmp.lt.u32.totalorder %s531_s26, %s526_s5 }
  0x30   : > { %p529_p11 = pnand %p527_p10, %p498_p13  ;;  %p535_p3 = scmp.lt.u32.totalorder %s526_s5, %s749_s9 }
  0x31   : > { %p534_p2 = por %p533_p0, %p532_p12 }
  0x32   : > { %p530_p8 = pneg %p529_p11 }
  0x33   : > { %p536_p4 = por %p535_p3, %p534_p2 }
  0x35   : > { %p537_p1 = pnand %p536_p4, %p530_p8 }
  0x37   : > { %540 = shalt.err (!%p537_p1)
}
  0x38   : > { %s541_s25 = scalar_lea.vmem %s190_s11, 128  ;;  %s613_s27 = smov [#allocation4]  }
  0x39   : > { %p542_p5 = scmp.ne.s32.totalorder %s190_s11, %s541_s25  ;;  %s546_s21 = sshll.u32 %s613_s27, 4  ;;  %s547_s21 = int_to_ptr.vmem [resolvable:$false] %s546_s21 }
  0x3a   : > { %s548_s22 = scalar_lea.vmem %s547_s21, 256  ;;  %p549_p7 = scmp.lt.s32.totalorder %s190_s11, %s547_s21 }
  0x3b   : > { %p544_p10 = pnand %p542_p5, %p498_p13  ;;  %p550_p6 = scmp.lt.s32.totalorder %s548_s22, %s541_s25 }
  0x3d   : > { %p545_p11 = pneg %p544_p10  ;;  %p551_p0 = por %p550_p6, %p549_p7 }
  0x3f   : > { %p552_p12 = pnand %p551_p0, %p545_p11 }
  0x41   : > { %555 = shalt.err (!%p552_p12)
}
  0x42   : > { %441 = dma.hbm_to_vmem [thread:$0]  (!%p702_p9), %s749_s9, 128, %s190_s11, %s178_s30  }
  0x43   : > { %p830_p8 = scmp.ne.s32.totalorder %s829_s29, 0 }
  0x44   : > { %s200_s28 = sand.u32 (!%p830_p8), 1, %s594_s13   ;;  %p831_p13 = scmp.ne.s32.totalorder (!%p830_p8), %s825_s23, 0 }
  0x45   : > { %198 = sbr.rel (%p830_p8) target bundleno = 261 (0x105), region = 28  ;;  %s427_s4 = sshll.u32 (!%p830_p8), %s200_s28, 3 }
  0x46   : > { %s201_s8 = scalar_lea.sflag (!%p830_p8), [#allocation3], %s200_s28  ;;  %s204_s10 = scalar_lea.vmem (!%p830_p8), [#allocation2], %s427_s4 }
  0x4c   : > { %581 = dma.done.wait (%p831_p13), %s201_s8, 128  }
  0x4d   : > { %583 = vsyncadd (%p831_p13), %s201_s8, 4294967168  ;;  %s210_s5 = scalar_lea.sflag [#allocation5], %s200_s28  ;;  %s213_s7 = scalar_lea.vmem [#allocation4], %s427_s4 }
  0x4e   : > { %585 = dma.done.wait (%p831_p13), %s210_s5, 128  }
  0x4f   : > { %587 = vsyncadd (%p831_p13), %s210_s5, 4294967168  ;;  %v257_v0 = vld [vmem:[%s204_s10] sm:$0xff]  ;;  %vm260_vm0 = vcmask 261120   ;;  %v258_v1 = vld [vmem:[%s213_s7] sm:$0xff]  ;;  %p244_p7 = scmp.lt.s32.totalorder %s602_s15, 1  ;;  %vm254_vm1 = vcmask 0  }
  0x50   : > { %v264_v2 = vmul.f32 %v257_v0, %v257_v0  ;;  %v268_v3 = vmul.f32 %v258_v1, %v258_v1  ;;  %v259_v4 = vmul.f32 %v258_v1, %v257_v0  ;;  %v614_v8 = vmov 0.0  }
  0x51   : > { %s840_s15 = smov (!%p244_p7, %s602_s15), 1 }
  0x52   : > { %v265_v5 = vsel %vm260_vm0, %v264_v2, 0.0  ;;  %v261_v6 = vsel %vm260_vm0, %v259_v4, 0.0  ;;  %v269_v7 = vsel %vm260_vm0, %v268_v3, 0.0  ;;  %s246_s29 = scalar_lea.vmem %s821_s2, %s840_s15  ;;  %s792_s30 = scalar_lea.vmem %s822_s3, %s840_s15 }
  0x53   : > { %266 = vadd.xlane.f32.xlu0 %v265_v5  ;;  %262 = vadd.xlane.f32.xlu1 %v261_v6  ;;  %255 = vst.msk [vmem:[%s246_s29] sm:$0x1] %vm254_vm1, %v614_v8  ;;  %256 = vst.msk [vmem:[%s792_s30] sm:$0x1] %vm254_vm1, %v614_v8 }
  0x57   : > { %270 = vadd.xlane.f32.xlu0 %v269_v7 }
  0x5a   : > { %v282_v26 = vld [vmem:[%s246_s29] sm:$0x1] }
  0x5b   : > { %v292_v35 = vld [vmem:[%s792_s30] sm:$0x1] }
  0xe0   : > { %v267_v9 = vpop.xlane.xlu0 %266  ;;  %v263_v10 = vpop.xlane.xlu1 %262 }
  0xe1   : > { %v275_v11 = vmax.f32 %v267_v9, 1e-16  ;;  %v273_v12 = vmul.f32 2.0, %v263_v10 }
  0xe3   : > { %492 = vrsqrt.f32 %v275_v11 }
  0xe4   : > { %v271_v13 = vpop.xlane.xlu0 %270 }
  0xe5   : > { %v272_v14 = vadd.f32 %v271_v13, %v267_v9  ;;  %v277_v15 = vmax.f32 %v271_v13, 1e-16 }
  0xe7   : > { %494 = vrsqrt.f32 %v277_v15  ;;  %v274_v16 = vsub.f32 %v272_v14, %v273_v12 }
  0xe9   : > { %v283_v17 = vrot.slane %v274_v16, 4 }
  0xeb   : > { %v284_v18 = vadd.f32 %v283_v17, %v274_v16 }
  0xed   : > { %v493_v19 = vpop.eup %492  ;;  %v285_v20 = vrot.slane %v284_v18, 2 }
  0xee   : > { %v279_v22 = vmul.f32 %v493_v19, %v263_v10 }
  0xef   : > { %v286_v21 = vadd.f32 %v285_v20, %v284_v18 }
  0xf1   : > { %v495_v23 = vpop.eup %494  ;;  %v287_v24 = vrot.slane %v286_v21, 1 }
  0xf2   : > { %v280_v25 = vmul.f32 %v495_v23, %v279_v22 }
  0xf3   : > { %v288_v27 = vadd.f32 %v287_v24, %v286_v21 }
  0xf4   : > { %v281_v28 = vsub.f32 1.0, %v280_v25 }
  0xf5   : > { %v289_v29 = vadd.f32 %v288_v27, %v282_v26 }
  0xf6   : > { %v293_v30 = vrot.slane %v281_v28, 4 }
  0xf7   : > { %291 = vst.msk [vmem:[%s246_s29] sm:$0x1] %vm254_vm1, %v289_v29 }
  0xf8   : > { %v294_v31 = vadd.f32 %v293_v30, %v281_v28 }
  0xfa   : > { %v295_v32 = vrot.slane %v294_v31, 2 }
  0xfc   : > { %v296_v33 = vadd.f32 %v295_v32, %v294_v31 }
  0xfe   : > { %v297_v34 = vrot.slane %v296_v33, 1 }
 0x100   : > { %v298_v36 = vadd.f32 %v297_v34, %v296_v33 }
 0x102   : > { %v299_v37 = vadd.f32 %v298_v36, %v292_v35 }
 0x104   : > { %300 = vst.msk [vmem:[%s792_s30] sm:$0x1] %vm254_vm1, %v299_v37 }
 0x105 PF: > { %s20_s17 = sadd.s32 1, %s610_s17   ;;  %s832_s12 = smov %s594_s13 }
 0x106   : > { %p17_p9 = scmp.ge.s32.totalorder %s20_s17, 4   ;;  %s833_s13 = smov %s598_s14 }
 0x107   : > { %s834_s14 = smov %s684_s24  ;;  %s835_s15 = smov %s606_s16 }
 0x108   : > { %s836_s16 = smov %s838_s19  ;;  %19 = sbr.rel (!%p17_p9) target bundleno = 6 (0x6), region = 97 }
 0x10f   :  { %330 = vsyncpa [#allocation3], 1 }
 0x110   :  { %332 = vsyncpa [#allocation3 + $0x1], 1 }
 0x111   :  { %333 = vsyncpa [#allocation5], 1 }
 0x112   :  { %335 = vsyncpa [#allocation5 + $0x1], 1 }

</bundles_post_ra>
